<compile_context>
chip_gen: v5e
topology: v5e:2x2
jax: 0.10.0
libtpu: 0.0.40
codegen_flags: <defaults>
</compile_context>

<pallas_src>
import jax
import jax.numpy as jnp
from jax.experimental import pallas as pl
from jax.experimental.pallas import tpu as pltpu


def _qfunc_kernel(x_ref, w1_ref, b1_ref, w2_ref, b2_ref, w3_ref, b3_ref, out_ref):
    # Batch on lanes: x is [obs_dim, TILE_B]; each layer is W @ x.
    x = x_ref[...]
    h1 = jnp.dot(w1_ref[...], x, preferred_element_type=jnp.float32)   # [h1, tb]
    h1 = jnp.maximum(h1 + b1_ref[...], 0.0)
    h2 = jnp.dot(w2_ref[...], h1, preferred_element_type=jnp.float32)  # [h2, tb]
    h2 = jnp.maximum(h2 + b2_ref[...], 0.0)
    q = jnp.dot(w3_ref[...], h2, preferred_element_type=jnp.float32)   # [act, tb]
    out_ref[...] = (q + b3_ref[...]).astype(out_ref.dtype)


def mlp_q_function(obs, params, *, tile_b=512):
    """Fused MLP Q-function forward.

    obs:     [B, obs_dim] float32
    params:  dict with w1[h1,obs], b1[h1,1], w2[h2,h1], b2[h2,1],
             w3[act,h2], b3[act,1]   (PyTorch [out, in] weight layout)
    returns: [B, act_dim], with the last axis squeezed iff act_dim == 1
             (matching torch.squeeze(q, -1)).
    """
    B, obs_dim = obs.shape
    act_dim = params["w3"].shape[0]
    h1 = params["w1"].shape[0]
    h2 = params["w2"].shape[0]

    # Batch-on-lanes layout: [obs_dim, B].
    x_t = obs.T

    if B <= tile_b:
        # Single full-extent block: no (8,128) divisibility requirement.
        tb = B
        b_pad = B
    else:
        assert tile_b % 128 == 0, "tile_b must be a multiple of the 128-lane width"
        tb = tile_b
        b_pad = pl.cdiv(B, tb) * tb
        if b_pad != B:
            x_t = jnp.pad(x_t, ((0, 0), (0, b_pad - B)))
    num_tiles = b_pad // tb

    weights = (params["w1"], params["b1"], params["w2"], params["b2"],
               params["w3"], params["b3"])

    vmem = pltpu.MemorySpace.VMEM
    # Weights / biases stay VMEM-resident across all batch tiles.
    resident = lambda a: pl.BlockSpec(a.shape, lambda i: (0, 0), memory_space=vmem)

    flops = 2 * b_pad * (obs_dim * h1 + h1 * h2 + h2 * act_dim)
    bytes_accessed = 4 * (b_pad * (obs_dim + act_dim)
                          + sum(int(w.size) for w in weights))

    q_t = pl.pallas_call(
        _qfunc_kernel,
        out_shape=jax.ShapeDtypeStruct((act_dim, b_pad), jnp.float32),
        grid=(num_tiles,),
        in_specs=[pl.BlockSpec((obs_dim, tb), lambda i: (0, i), memory_space=vmem)]
                 + [resident(w) for w in weights],
        out_specs=pl.BlockSpec((act_dim, tb), lambda i: (0, i), memory_space=vmem),
        compiler_params=pltpu.CompilerParams(dimension_semantics=("parallel",)),
        cost_estimate=pl.CostEstimate(flops=flops, transcendentals=0,
                                      bytes_accessed=bytes_accessed),
    )(x_t, *weights)

    q = q_t[:, :B].T                     # back to [B, act_dim]
    # torch.squeeze(q, -1): only drops the last axis when it has size 1.
    if act_dim == 1:
        q = jnp.squeeze(q, axis=-1)
    return q


def init_params(key, obs_dim, hidden_sizes, act_dim):
    """PyTorch-style (uniform +-1/sqrt(fan_in)) init, [out, in] weight layout."""
    sizes = [obs_dim] + list(hidden_sizes) + [act_dim]
    params = {}
    for j in range(len(sizes) - 1):
        fan_in, fan_out = sizes[j], sizes[j + 1]
        key, kw, kb = jax.random.split(key, 3)
        bound = 1.0 / (fan_in ** 0.5)
        params[f"w{j + 1}"] = jax.random.uniform(
            kw, (fan_out, fan_in), jnp.float32, -bound, bound)
        params[f"b{j + 1}"] = jax.random.uniform(
            kb, (fan_out, 1), jnp.float32, -bound, bound)
    return params


def _reference(obs, params):
    h = jnp.maximum(obs @ params["w1"].T + params["b1"].T, 0.0)
    h = jnp.maximum(h @ params["w2"].T + params["b2"].T, 0.0)
    q = h @ params["w3"].T + params["b3"].T
    if params["w3"].shape[0] == 1:
        q = jnp.squeeze(q, axis=-1)
    return q


if __name__ == "__main__":
    key = jax.random.PRNGKey(0)
    k_obs, k_par, k_obs2 = jax.random.split(key, 3)

    obs_dim, hidden_sizes, act_dim = 16, (32, 32), 4
    params = init_params(k_par, obs_dim, hidden_sizes, act_dim)

    # Small batch: single full-extent block path (matches the module's spec shapes).
    obs_small = jax.random.normal(k_obs, (2, obs_dim), jnp.float32)
    q_small = jax.block_until_ready(mlp_q_function(obs_small, params))
    assert q_small.shape == (2, act_dim)
    assert jnp.allclose(q_small, _reference(obs_small, params), atol=1e-5), \
        "small-batch mismatch vs. reference"

    # Larger, non-tile-aligned batch: exercises the grid + zero-pad path.
    obs_big = jax.random.normal(k_obs2, (777, obs_dim), jnp.float32)
    q_big = jax.block_until_ready(mlp_q_function(obs_big, params, tile_b=256))
    assert q_big.shape == (777, act_dim)
    assert jnp.allclose(q_big, _reference(obs_big, params), atol=1e-5), \
        "large-batch mismatch vs. reference"

    print("KERNEL_OK")
</pallas_src>

<mosaic_0001>
module attributes {stable_mosaic.version = 11 : i64} {
  func.func @_qfunc_kernel(%arg0: i32, %arg1: memref<16x2xf32, #tpu.memory_space<vmem>>, %arg2: memref<32x16xf32, #tpu.memory_space<vmem>>, %arg3: memref<32x1xf32, #tpu.memory_space<vmem>>, %arg4: memref<32x32xf32, #tpu.memory_space<vmem>>, %arg5: memref<32x1xf32, #tpu.memory_space<vmem>>, %arg6: memref<4x32xf32, #tpu.memory_space<vmem>>, %arg7: memref<4x1xf32, #tpu.memory_space<vmem>>, %arg8: memref<4x2xf32, #tpu.memory_space<vmem>>) attributes {dimension_semantics = [#tpu.dimension_semantics<parallel>], iteration_bounds = array<i64: 1>, scalar_prefetch = 0 : i64, scratch_operands = 0 : i64, tpu.core_type = #tpu.core_type<tc>, window_params = [{transform_indices = @transform_0, window_bounds = array<i64: 16, 2>}, {pipeline_mode = #tpu.pipeline_mode<synchronous>, transform_indices = @transform_1, window_bounds = array<i64: 32, 16>}, {pipeline_mode = #tpu.pipeline_mode<synchronous>, transform_indices = @transform_2, window_bounds = array<i64: 32, 1>}, {pipeline_mode = #tpu.pipeline_mode<synchronous>, transform_indices = @transform_3, window_bounds = array<i64: 32, 32>}, {pipeline_mode = #tpu.pipeline_mode<synchronous>, transform_indices = @transform_4, window_bounds = array<i64: 32, 1>}, {pipeline_mode = #tpu.pipeline_mode<synchronous>, transform_indices = @transform_5, window_bounds = array<i64: 4, 32>}, {pipeline_mode = #tpu.pipeline_mode<synchronous>, transform_indices = @transform_6, window_bounds = array<i64: 4, 1>}, {transform_indices = @transform_7, window_bounds = array<i64: 4, 2>}]} {
    %c0 = arith.constant 0 : index
    %c0_0 = arith.constant 0 : index
    %0 = vector.load %arg1[%c0, %c0_0] : memref<16x2xf32, #tpu.memory_space<vmem>>, vector<16x2xf32>
    %c0_1 = arith.constant 0 : index
    %c0_2 = arith.constant 0 : index
    %1 = vector.load %arg2[%c0_1, %c0_2] : memref<32x16xf32, #tpu.memory_space<vmem>>, vector<32x16xf32>
    %cst = arith.constant dense<0.000000e+00> : vector<32x2xf32>
    %2 = tpu.matmul %1, %0, %cst {dimension_numbers = #tpu.dot_dimension_numbers<[1], [0], [0], [1], [0, 0, 1, 1], [], []>} : vector<32x16xf32>, vector<16x2xf32>, vector<32x2xf32> -> vector<32x2xf32>
    %c0_3 = arith.constant 0 : index
    %c0_4 = arith.constant 0 : index
    %3 = vector.load %arg3[%c0_3, %c0_4] : memref<32x1xf32, #tpu.memory_space<vmem>>, vector<32x1xf32>
    %4 = vector.broadcast %3 : vector<32x1xf32> to vector<32x2xf32>
    %5 = arith.addf %2, %4 : vector<32x2xf32>
    %cst_5 = arith.constant 0.000000e+00 : f32
    %6 = vector.broadcast %cst_5 : f32 to vector<32x2xf32>
    %7 = arith.maximumf %5, %6 : vector<32x2xf32>
    %c0_6 = arith.constant 0 : index
    %c0_7 = arith.constant 0 : index
    %8 = vector.load %arg4[%c0_6, %c0_7] : memref<32x32xf32, #tpu.memory_space<vmem>>, vector<32x32xf32>
    %cst_8 = arith.constant dense<0.000000e+00> : vector<32x2xf32>
    %9 = tpu.matmul %8, %7, %cst_8 {dimension_numbers = #tpu.dot_dimension_numbers<[1], [0], [0], [1], [0, 0, 1, 1], [], []>} : vector<32x32xf32>, vector<32x2xf32>, vector<32x2xf32> -> vector<32x2xf32>
    %c0_9 = arith.constant 0 : index
    %c0_10 = arith.constant 0 : index
    %10 = vector.load %arg5[%c0_9, %c0_10] : memref<32x1xf32, #tpu.memory_space<vmem>>, vector<32x1xf32>
    %11 = vector.broadcast %10 : vector<32x1xf32> to vector<32x2xf32>
    %12 = arith.addf %9, %11 : vector<32x2xf32>
    %cst_11 = arith.constant 0.000000e+00 : f32
    %13 = vector.broadcast %cst_11 : f32 to vector<32x2xf32>
    %14 = arith.maximumf %12, %13 : vector<32x2xf32>
    %c0_12 = arith.constant 0 : index
    %c0_13 = arith.constant 0 : index
    %15 = vector.load %arg6[%c0_12, %c0_13] : memref<4x32xf32, #tpu.memory_space<vmem>>, vector<4x32xf32>
    %cst_14 = arith.constant dense<0.000000e+00> : vector<4x2xf32>
    %16 = tpu.matmul %15, %14, %cst_14 {dimension_numbers = #tpu.dot_dimension_numbers<[1], [0], [0], [1], [0, 0, 1, 1], [], []>} : vector<4x32xf32>, vector<32x2xf32>, vector<4x2xf32> -> vector<4x2xf32>
    %c0_15 = arith.constant 0 : index
    %c0_16 = arith.constant 0 : index
    %17 = vector.load %arg7[%c0_15, %c0_16] : memref<4x1xf32, #tpu.memory_space<vmem>>, vector<4x1xf32>
    %18 = vector.broadcast %17 : vector<4x1xf32> to vector<4x2xf32>
    %19 = arith.addf %16, %18 : vector<4x2xf32>
    %c0_17 = arith.constant 0 : index
    %c0_18 = arith.constant 0 : index
    %20 = vector.load %arg8[%c0_17, %c0_18] : memref<4x2xf32, #tpu.memory_space<vmem>>, vector<4x2xf32>
    tpu.vector_store %arg8[%c0_17, %c0_18], %19 {strides = array<i32>} : memref<4x2xf32, #tpu.memory_space<vmem>>, vector<4x2xf32>,
    return
  }
  func.func @transform_0(%arg0: i32) -> (i32, i32) {
    %c0_i32 = arith.constant 0 : i32
    %c0_i32_0 = arith.constant 0 : i32
    return %c0_i32, %arg0 : i32, i32
  }
  func.func @transform_1(%arg0: i32) -> (i32, i32) {
    %c0_i32 = arith.constant 0 : i32
    %c0_i32_0 = arith.constant 0 : i32
    %c0_i32_1 = arith.constant 0 : i32
    return %c0_i32, %c0_i32_0 : i32, i32
  }
  func.func @transform_2(%arg0: i32) -> (i32, i32) {
    %c0_i32 = arith.constant 0 : i32
    %c0_i32_0 = arith.constant 0 : i32
    %c0_i32_1 = arith.constant 0 : i32
    return %c0_i32, %c0_i32_0 : i32, i32
  }
  func.func @transform_3(%arg0: i32) -> (i32, i32) {
    %c0_i32 = arith.constant 0 : i32
    %c0_i32_0 = arith.constant 0 : i32
    %c0_i32_1 = arith.constant 0 : i32
    return %c0_i32, %c0_i32_0 : i32, i32
  }
  func.func @transform_4(%arg0: i32) -> (i32, i32) {
    %c0_i32 = arith.constant 0 : i32
    %c0_i32_0 = arith.constant 0 : i32
    %c0_i32_1 = arith.constant 0 : i32
    return %c0_i32, %c0_i32_0 : i32, i32
  }
  func.func @transform_5(%arg0: i32) -> (i32, i32) {
    %c0_i32 = arith.constant 0 : i32
    %c0_i32_0 = arith.constant 0 : i32
    %c0_i32_1 = arith.constant 0 : i32
    return %c0_i32, %c0_i32_0 : i32, i32
  }
  func.func @transform_6(%arg0: i32) -> (i32, i32) {
    %c0_i32 = arith.constant 0 : i32
    %c0_i32_0 = arith.constant 0 : i32
    %c0_i32_1 = arith.constant 0 : i32
    return %c0_i32, %c0_i32_0 : i32, i32
  }
  func.func @transform_7(%arg0: i32) -> (i32, i32) {
    %c0_i32 = arith.constant 0 : i32
    %c0_i32_0 = arith.constant 0 : i32
    return %c0_i32, %arg0 : i32, i32
  }
}

</mosaic_0001>

<bundles_post_ra>
// kernel: tpu_custom_call.1
= control target key start
LH: loop header
LB: loop body
LE: loop exit
PB: predicated region body
PF: predicated region fallthrough
CT: control target
= control target key end

     0   :  { %v235_v2 = vmov 0   ;;  %vm56_vm0 = vcmask 130048   ;;  %vm130_vm1 = vcmask 261120   ;;  %vm206_vm2 = vcmask 11264   ;;  %s348_s0 = inlined_call_operand.vmem [shape: f32[16,2], index: 0, kind: input, shape index: {}]   ;;  %s349_s1 = inlined_call_operand.vmem [shape: f32[32,16], index: 1, kind: input, shape index: {}]   ;;  %s350_s2 = inlined_call_operand.vmem [shape: f32[32,1], index: 2, kind: input, shape index: {}]   ;;  %s351_s4 = inlined_call_operand.vmem [shape: f32[32,1], index: 4, kind: input, shape index: {}]   ;;  %s352_s6 = inlined_call_operand.vmem [shape: f32[4,1], index: 6, kind: input, shape index: {}]   ;;  %s353_s3 = inlined_call_operand.vmem [shape: f32[32,32], index: 3, kind: input, shape index: {}]   ;;  %s354_s5 = inlined_call_operand.vmem [shape: f32[4,32], index: 5, kind: input, shape index: {}]   ;;  %s355_s7 = inlined_call_operand.vmem [shape: f32[4,2], index: 7, kind: output, shape index: {}]  }
   0x1   :  { %v27_v0 = vld [vmem:[%s348_s0 + $0x8] sm:$0xff]  ;;  %v26_v1 = vld [vmem:[%s348_s0] sm:$0xff]  ;;  %233 = vset.pattern.permute.xlu1 %v235_v2  ;;  %232 = vset.pattern.permute.xlu0 %v235_v2  ;;  %v35_v4 = vld [vmem:[%s350_s2 + $0x18] sm:$0xff] }
   0x2   :  { %83 = vmatpush.msra.mxu0 %v27_v0  ;;  %v28_v3 = vld [vmem:[%s349_s1] sm:$0xff]  ;;  %v33_v5 = vld [vmem:[%s350_s2 + $0x8] sm:$0xff]  ;;  %221 = vmatpush.msra.mxu1 %v27_v0  ;;  %v31_v6 = vld [vmem:[%s349_s1 + $0x18] sm:$0xff] }
   0x3   :  { %53 = vperm.xlu0 %232, %v35_v4   ;;  %43 = vperm.xlu1 %233, %v33_v5   ;;  %v34_v7 = vld [vmem:[%s350_s2 + $0x10] sm:$0xff]  ;;  %v32_v8 = vld [vmem:[%s350_s2] sm:$0xff]  ;;  %v29_v9 = vld [vmem:[%s349_s1 + $0x8] sm:$0xff] }
   0x4   :  { %84 = vmatpush.msra.mxu0 %v26_v1  ;;  %222 = vmatpush.msra.mxu1 %v26_v1  ;;  %v107_v10 = vld [vmem:[%s351_s4 + $0x8] sm:$0xff]  ;;  %v106_v11 = vld [vmem:[%s351_s4] sm:$0xff]  ;;  %v30_v12 = vld [vmem:[%s349_s1 + $0x10] sm:$0xff] }
   0x5   :  { %212 = vmatmul.msk.f32.vlgmr.msra.gmra.mxu0 %vm56_vm0, %v28_v3  ;;  %215 = vmatmul.msk.f32.vlgmr.msra.gmra.mxu1 %vm56_vm0, %v31_v6  ;;  %v109_v18 = vld [vmem:[%s351_s4 + $0x18] sm:$0xff]  ;;  %v108_v21 = vld [vmem:[%s351_s4 + $0x10] sm:$0xff]  ;;  %v177_v27 = vld [vmem:[%s352_s6] sm:$0xf] }
   0x6   :  { %234 = vset.pattern.permute.xlu2 %v235_v2  ;;  %v102_v32 = vld [vmem:[%s353_s3] sm:$0xff]  ;;  %v103_v33 = vld [vmem:[%s353_s3 + $0x8] sm:$0xff]  ;;  %v104_v34 = vld [vmem:[%s353_s3 + $0x10] sm:$0xff] }
   0x7   :  { %127 = vperm.xlu2 %234, %v109_v18   ;;  %v105_v35 = vld [vmem:[%s353_s3 + $0x18] sm:$0xff]  ;;  %v176_v52 = vld [vmem:[%s354_s5] sm:$0xf] }
   0xb   :  { %48 = vperm.xlu0 %232, %v34_v7   ;;  %38 = vperm.xlu1 %233, %v32_v8  }
   0xd   :  { %213 = vmatmul.msk.f32.gmra.mxu0 %vm56_vm0, %v29_v9 }
   0xf   :  { %122 = vperm.xlu2 %234, %v108_v21  }
  0x13   :  { %117 = vperm.xlu0 %232, %v107_v10   ;;  %112 = vperm.xlu1 %233, %v106_v11  }
  0x15   :  { %214 = vmatmul.msk.f32.gmra.mxu0 %vm56_vm0, %v30_v12 }
  0x17   :  { %180 = vperm.xlu2 %234, %v177_v27  }
  0x61   :  { %v128_v36 = vpop.permute.xlu2 %127 }
  0x69   :  { %v123_v38 = vpop.permute.xlu2 %122 }
  0x71   :  { %v181_v53 = vpop.permute.xlu2 %180 }
  0x75   :  { %v54_v13 = vpop.permute.xlu0 %53  ;;  %v44_v19 = vpop.permute.xlu1 %43 }
  0x7d   :  { %v49_v22 = vpop.permute.xlu0 %48  ;;  %v39_v23 = vpop.permute.xlu1 %38 }
  0x82   :  { %v86_v14 = vpop.f32.mrf.mxu0  ;;  %v95_v15 = vpop.f32.mrf.mxu1 }
  0x83   :  { %v96_v16 = vadd.f32 %v95_v15, %v54_v13  ;;  %v87_v28 = vadd.f32 %v86_v14, %v39_v23 }
  0x85   :  { %v101_v17 = vmax.f32 %v96_v16, 0.0  ;;  %v98_v31 = vmax.f32 %v87_v28, 0.0  ;;  %v118_v43 = vpop.permute.xlu0 %117  ;;  %v113_v47 = vpop.permute.xlu1 %112 }
  0x87   :  { %155 = vmatpush.msrb.mxu1 %v101_v17  ;;  %223 = vmatpush.msra.mxu2 %v101_v17 }
  0x88   :  { %224 = vmatpush.msra.mxu3 %v101_v17 }
  0x8a   :  { %v89_v20 = vpop.f32.mrf.mxu0 }
  0x8b   :  { %v90_v25 = vadd.f32 %v89_v20, %v44_v19 }
  0x8d   :  { %v99_v30 = vmax.f32 %v90_v25, 0.0 }
  0x92   :  { %v92_v24 = vpop.f32.mrf.mxu0 }
  0x93   :  { %v93_v26 = vadd.f32 %v92_v24, %v49_v22 }
  0x95   :  { %v100_v29 = vmax.f32 %v93_v26, 0.0 }
  0x97   :  { %156 = vmatpush.msrb.mxu1 %v100_v29  ;;  %225 = vmatpush.msra.mxu2 %v100_v29 }
  0x98   :  { %226 = vmatpush.msra.mxu3 %v100_v29 }
  0x99   :  { %157 = vmatpush.msrb.mxu1 %v99_v30  ;;  %227 = vmatpush.msra.mxu2 %v99_v30 }
  0x9a   :  { %228 = vmatpush.msra.mxu3 %v99_v30 }
  0x9b   :  { %158 = vmatpush.msrb.mxu1 %v98_v31  ;;  %229 = vmatpush.msra.mxu2 %v98_v31 }
  0x9c   :  { %230 = vmatpush.msra.mxu3 %v98_v31  ;;  %216 = vmatmul.msk.f32.vlgmr.msrb.gmra.mxu1 %vm130_vm1, %v102_v32 }
  0x9d   :  { %217 = vmatmul.msk.f32.vlgmr.msra.gmra.mxu2 %vm130_vm1, %v103_v33  ;;  %218 = vmatmul.msk.f32.vlgmr.msra.gmra.mxu3 %vm130_vm1, %v104_v34 }
  0xa5   :  { %219 = vmatmul.msk.f32.gmra.mxu3 %vm130_vm1, %v105_v35 }
 0x119   :  { %v160_v44 = vpop.f32.mrf.mxu1 }
 0x11a   :  { %v161_v48 = vadd.f32 %v160_v44, %v113_v47 }
 0x11c   :  { %v172_v51 = vmax.f32 %v161_v48, 0.0 }
 0x120   :  { %v166_v37 = vpop.f32.mrf.mxu3  ;;  %v163_v39 = vpop.f32.mrf.mxu2 }
 0x121   :  { %v167_v41 = vadd.f32 %v166_v37, %v123_v38  ;;  %v164_v45 = vadd.f32 %v163_v39, %v118_v43 }
 0x123   :  { %v174_v49 = vmax.f32 %v167_v41, 0.0  ;;  %v173_v50 = vmax.f32 %v164_v45, 0.0 }
 0x128   :  { %v169_v40 = vpop.f32.mrf.mxu3 }
 0x129   :  { %v170_v42 = vadd.f32 %v169_v40, %v128_v36 }
 0x12b   :  { %v175_v46 = vmax.f32 %v170_v42, 0.0 }
 0x12d   :  { %198 = vmatpush.msrb.mxu2 %v175_v46 }
 0x12f   :  { %199 = vmatpush.msrb.mxu2 %v174_v49 }
 0x131   :  { %200 = vmatpush.msrb.mxu2 %v173_v50 }
 0x133   :  { %201 = vmatpush.msrb.mxu2 %v172_v51 }
 0x134   :  { %220 = vmatmul.msk.f32.vlgmr.msrb.gmra.mxu2 %vm130_vm1, %v176_v52 }
 0x1b7   :  { %v203_v54 = vpop.f32.mrf.mxu2 }
 0x1b8   :  { %v204_v55 = vadd.f32 %v203_v54, %v181_v53 }
 0x1ba   :  { %207 = vst.msk [vmem:[%s355_s7] sm:$0xf] %vm206_vm2, %v204_v55 }

</bundles_post_ra>
